<compile_context>
chip_gen: v6e
topology: v6e:2x2x1
jax: 0.10.0
libtpu: 0.0.40
codegen_flags: <defaults>
</compile_context>

<pallas_src>
import functools

import jax
import jax.numpy as jnp
from jax.experimental import pallas as pl
from jax.experimental.pallas import tpu as pltpu


ACT_DTYPE = jnp.bfloat16     # MXU-friendly activation / weight dtype
LN_EPS = 1e-12               # BERT LayerNorm eps


# ----------------------------- tiling helpers ------------------------------

def _tile(dim, target):
    """Full dim when small / non-divisible, otherwise an MXU-aligned target."""
    return dim if (dim <= target or dim % target != 0) else target


def _vmem_limit(*block_nbytes):
    """2x (double buffering) + headroom, capped below v7x's 64 MiB VMEM."""
    need = 2 * sum(int(b) for b in block_nbytes) + (4 << 20)
    return int(min(max(need, 8 << 20), 48 << 20))


# --------------------------- tiled linear kernel ----------------------------

def _linear_kernel(x_ref, w_ref, b_ref, o_ref, acc_ref, *, activation):
    @pl.when(pl.program_id(2) == 0)
    def _():
        acc_ref[...] = jnp.zeros_like(acc_ref)

    acc_ref[...] += jnp.dot(x_ref[...], w_ref[...],
                            preferred_element_type=jnp.float32)

    @pl.when(pl.program_id(2) == pl.num_programs(2) - 1)
    def _():
        y = acc_ref[...] + b_ref[...]                    # bias add in f32
        if activation == "gelu":
            y = jax.nn.gelu(y, approximate=False)        # exact erf GELU (BERT)
        elif activation == "tanh":
            y = jnp.tanh(y)
        o_ref[...] = y.astype(o_ref.dtype)


def linear(x, w, b, activation="none", out_dtype=None,
           tm_target=256, tn_target=256, tk_target=512):
    """act(x @ w + b); x:[M,K] (bf16), w:[K,N] (bf16), b:[N] (f32)."""
    M, K = x.shape
    N = w.shape[1]
    out_dtype = out_dtype or x.dtype
    tm, tn, tk = _tile(M, tm_target), _tile(N, tn_target), _tile(K, tk_target)
    isz = jnp.dtype(x.dtype).itemsize
    limit = _vmem_limit(tm * tk * isz, tk * tn * isz,
                        tm * tn * jnp.dtype(out_dtype).itemsize,
                        tm * tn * 4, tn * 4)
    return pl.pallas_call(
        functools.partial(_linear_kernel, activation=activation),
        out_shape=jax.ShapeDtypeStruct((M, N), out_dtype),
        grid=(M // tm, N // tn, K // tk),
        in_specs=[
            pl.BlockSpec((tm, tk), lambda i, j, k: (i, k)),
            pl.BlockSpec((tk, tn), lambda i, j, k: (k, j)),
            pl.BlockSpec((1, tn), lambda i, j, k: (0, j)),
        ],
        out_specs=pl.BlockSpec((tm, tn), lambda i, j, k: (i, j)),
        scratch_shapes=[pltpu.VMEM((tm, tn), jnp.float32)],
        compiler_params=pltpu.CompilerParams(
            dimension_semantics=("parallel", "parallel", "arbitrary"),
            vmem_limit_bytes=limit),
    )(x, w, b.reshape(1, N).astype(jnp.float32))


# ------------------ tiled linear + residual + LayerNorm ---------------------

def _linear_res_ln_kernel(x_ref, w_ref, b_ref, r_ref, g_ref, bt_ref,
                          o_ref, acc_ref, *, eps):
    @pl.when(pl.program_id(1) == 0)
    def _():
        acc_ref[...] = jnp.zeros_like(acc_ref)

    acc_ref[...] += jnp.dot(x_ref[...], w_ref[...],
                            preferred_element_type=jnp.float32)

    @pl.when(pl.program_id(1) == pl.num_programs(1) - 1)
    def _():
        y = acc_ref[...] + b_ref[...] + r_ref[...].astype(jnp.float32)
        mean = jnp.mean(y, axis=-1, keepdims=True)
        var = jnp.mean(jnp.square(y - mean), axis=-1, keepdims=True)
        y = (y - mean) * jax.lax.rsqrt(var + eps)
        o_ref[...] = (y * g_ref[...] + bt_ref[...]).astype(o_ref.dtype)


def linear_residual_layernorm(x, w, b, res, gamma, beta, eps=LN_EPS,
                              tm_target=256, tk_target=512):
    """LayerNorm(x @ w + b + res); output N (= hidden) kept whole per block."""
    M, K = x.shape
    N = w.shape[1]
    tm, tk = _tile(M, tm_target), _tile(K, tk_target)
    isz = jnp.dtype(x.dtype).itemsize
    limit = _vmem_limit(tm * tk * isz, tk * N * isz, tm * N * isz,
                        tm * N * isz, tm * N * 4, 3 * N * 4)
    return pl.pallas_call(
        functools.partial(_linear_res_ln_kernel, eps=eps),
        out_shape=jax.ShapeDtypeStruct((M, N), res.dtype),
        grid=(M // tm, K // tk),
        in_specs=[
            pl.BlockSpec((tm, tk), lambda i, k: (i, k)),
            pl.BlockSpec((tk, N), lambda i, k: (k, 0)),
            pl.BlockSpec((1, N), lambda i, k: (0, 0)),
            pl.BlockSpec((tm, N), lambda i, k: (i, 0)),
            pl.BlockSpec((1, N), lambda i, k: (0, 0)),
            pl.BlockSpec((1, N), lambda i, k: (0, 0)),
        ],
        out_specs=pl.BlockSpec((tm, N), lambda i, k: (i, 0)),
        scratch_shapes=[pltpu.VMEM((tm, N), jnp.float32)],
        compiler_params=pltpu.CompilerParams(
            dimension_semantics=("parallel", "arbitrary"),
            vmem_limit_bytes=limit),
    )(x, w, b.reshape(1, N).astype(jnp.float32), res,
      gamma.reshape(1, N), beta.reshape(1, N))


# --------------------------- plain LayerNorm kernel --------------------------

def _layernorm_kernel(x_ref, g_ref, b_ref, o_ref, *, eps):
    x = x_ref[...].astype(jnp.float32)
    mean = jnp.mean(x, axis=-1, keepdims=True)
    var = jnp.mean(jnp.square(x - mean), axis=-1, keepdims=True)
    y = (x - mean) * jax.lax.rsqrt(var + eps)
    o_ref[...] = (y * g_ref[...] + b_ref[...]).astype(o_ref.dtype)


def layernorm(x, gamma, beta, out_dtype=ACT_DTYPE, eps=LN_EPS, tm_target=512):
    M, H = x.shape
    tm = _tile(M, tm_target)
    return pl.pallas_call(
        functools.partial(_layernorm_kernel, eps=eps),
        out_shape=jax.ShapeDtypeStruct((M, H), out_dtype),
        grid=(M // tm,),
        in_specs=[pl.BlockSpec((tm, H), lambda i: (i, 0)),
                  pl.BlockSpec((1, H), lambda i: (0, 0)),
                  pl.BlockSpec((1, H), lambda i: (0, 0))],
        out_specs=pl.BlockSpec((tm, H), lambda i: (i, 0)),
        compiler_params=pltpu.CompilerParams(
            dimension_semantics=("parallel",),
            vmem_limit_bytes=_vmem_limit(tm * H * 4, tm * H * 2, 2 * H * 4)),
    )(x, gamma.reshape(1, H), beta.reshape(1, H))


# ------------------------------ attention kernel -----------------------------

def _attention_kernel(qkv_ref, bias_ref, o_ref, *, n_heads, d_head):
    H = n_heads * d_head
    qkv = qkv_ref[...]               # [S, 3H] bf16 (1/sqrt(dH) folded into Wq)
    bias = bias_ref[...]             # [1, S] f32 additive mask (0 / -1e9)
    ctx = []
    for h in range(n_heads):         # heads unrolled; split done in VMEM
        q = qkv[:, h * d_head:(h + 1) * d_head]
        k = qkv[:, H + h * d_head:H + (h + 1) * d_head]
        v = qkv[:, 2 * H + h * d_head:2 * H + (h + 1) * d_head]
        # Contract d_head directly (no explicit K transpose), f32 accumulation.
        s = jax.lax.dot_general(q, k, (((1,), (1,)), ((), ())),
                                preferred_element_type=jnp.float32)
        s = s + bias
        s = s - jnp.max(s, axis=-1, keepdims=True)
        p = jnp.exp(s)
        p = p * pl.reciprocal(jnp.sum(p, axis=-1, keepdims=True), approx=True)
        ctx.append(jnp.dot(p.astype(qkv.dtype), v,
                           preferred_element_type=jnp.float32))
    # Lane-dense [S, H] store, already in (B, S, H) activation layout.
    o_ref[...] = jnp.concatenate(ctx, axis=-1).astype(o_ref.dtype)


def multihead_attention(qkv, mask_bias, n_heads):
    """qkv: [B, S, 3H] (fused projection); mask_bias: [B, 1, S] -> [B, S, H]."""
    B, S, H3 = qkv.shape
    H = H3 // 3
    d_head = H // n_heads
    limit = _vmem_limit(S * H3 * 2, S * H * 2, 2 * S * S * 4)
    # TODO(synk): for very long sequences, also tile the query axis (flash-style).
    return pl.pallas_call(
        functools.partial(_attention_kernel, n_heads=n_heads, d_head=d_head),
        out_shape=jax.ShapeDtypeStruct((B, S, H), qkv.dtype),
        grid=(B,),
        in_specs=[pl.BlockSpec((pl.Squeezed(), S, H3), lambda b: (b, 0, 0)),
                  pl.BlockSpec((pl.Squeezed(), 1, S), lambda b: (b, 0, 0))],
        out_specs=pl.BlockSpec((pl.Squeezed(), S, H), lambda b: (b, 0, 0)),
        compiler_params=pltpu.CompilerParams(
            dimension_semantics=("parallel",),
            vmem_limit_bytes=limit),
    )(qkv, mask_bias)


# ------------------------ tiny pooler / classifier GEMMs ---------------------

def _small_linear_kernel(x_ref, w_ref, b_ref, o_ref, *, activation):
    y = jnp.dot(x_ref[...], w_ref[...], preferred_element_type=jnp.float32)
    y = y + b_ref[...]
    if activation == "tanh":
        y = jnp.tanh(y)
    o_ref[...] = y.astype(o_ref.dtype)


def small_linear(x, w, b, activation="none", out_dtype=jnp.float32):
    M, _ = x.shape
    N = w.shape[1]
    vmem = pl.BlockSpec(memory_space=pltpu.MemorySpace.VMEM)
    return pl.pallas_call(
        functools.partial(_small_linear_kernel, activation=activation),
        out_shape=jax.ShapeDtypeStruct((M, N), out_dtype),
        in_specs=[vmem, vmem, vmem],
        out_specs=vmem,
    )(x, w, b.reshape(1, N).astype(jnp.float32))


# ----------------------------- parameter handling ----------------------------

def init_params(key, cfg):
    H, I = cfg["hidden"], cfg["intermediate"]
    keys = iter(jax.random.split(key, 128))

    def nrm(shape):
        return (0.02 * jax.random.normal(next(keys), shape)).astype(jnp.float32)

    zeros = lambda s: jnp.zeros(s, jnp.float32)
    ones = lambda s: jnp.ones(s, jnp.float32)

    params = {
        "word_emb": nrm((cfg["vocab"], H)),
        "pos_emb":  nrm((cfg["max_pos"], H)),
        "type_emb": nrm((cfg["type_vocab"], H)),
        "emb_ln_g": ones((H,)), "emb_ln_b": zeros((H,)),
        "pool_w": nrm((H, H)), "pool_b": zeros((H,)),
        "cls_w":  nrm((H, cfg["num_labels"])), "cls_b": zeros((cfg["num_labels"],)),
        "layers": [],
    }
    for _ in range(cfg["layers"]):
        params["layers"].append({
            "wq": nrm((H, H)), "bq": zeros((H,)),
            "wk": nrm((H, H)), "bk": zeros((H,)),
            "wv": nrm((H, H)), "bv": zeros((H,)),
            "wo": nrm((H, H)), "bo": zeros((H,)),
            "ln1_g": ones((H,)), "ln1_b": zeros((H,)),
            "w1": nrm((H, I)), "b1": zeros((I,)),
            "w2": nrm((I, H)), "b2": zeros((H,)),
            "ln2_g": ones((H,)), "ln2_b": zeros((H,)),
        })
    return params


def prepare_params(params, cfg):
    """Fuse QKV (scale folded into Wq), cast matmul weights to bf16."""
    H, nH = cfg["hidden"], cfg["heads"]
    scale = 1.0 / ((H // nH) ** 0.5)
    prep = {
        "word_emb": params["word_emb"],
        "pos_emb": params["pos_emb"],
        "type_emb": params["type_emb"],
        "emb_ln_g": params["emb_ln_g"], "emb_ln_b": params["emb_ln_b"],
        "pool_w": params["pool_w"].astype(ACT_DTYPE), "pool_b": params["pool_b"],
        "cls_w": params["cls_w"], "cls_b": params["cls_b"],
        "layers": [],
    }
    for l in params["layers"]:
        prep["layers"].append({
            "w_qkv": jnp.concatenate([l["wq"] * scale, l["wk"], l["wv"]],
                                     axis=1).astype(ACT_DTYPE),
            "b_qkv": jnp.concatenate([l["bq"] * scale, l["bk"], l["bv"]]),
            "wo": l["wo"].astype(ACT_DTYPE), "bo": l["bo"],
            "ln1_g": l["ln1_g"], "ln1_b": l["ln1_b"],
            "w1": l["w1"].astype(ACT_DTYPE), "b1": l["b1"],
            "w2": l["w2"].astype(ACT_DTYPE), "b2": l["b2"],
            "ln2_g": l["ln2_g"], "ln2_b": l["ln2_b"],
        })
    return prep


# ---------------------------------- forward ----------------------------------

def bert_classifier_forward(prep, input_ids, attention_mask, cfg):
    B, S = input_ids.shape
    H = cfg["hidden"]
    nH = cfg["heads"]

    # Embeddings (gather + add in plain JAX; LayerNorm in Pallas, no zero residual)
    emb = (jnp.take(prep["word_emb"], input_ids, axis=0)
           + prep["pos_emb"][:S][None, :, :]
           + prep["type_emb"][0][None, None, :])          # token_type_ids = 0
    x = layernorm(emb.reshape(B * S, H), prep["emb_ln_g"], prep["emb_ln_b"])

    mask_bias = ((1.0 - attention_mask.astype(jnp.float32)) * -1e9).reshape(B, 1, S)

    for layer in prep["layers"]:
        # Fused QKV projection: [B*S, 3H] bf16, MXU f32 accumulation.
        qkv = linear(x, layer["w_qkv"], layer["b_qkv"])
        # Attention reads [B, S, 3H] and writes lane-dense [B, S, H] directly
        # (no plain-JAX head-split / merge transposes -> no extra HBM traffic).
        ctx = multihead_attention(qkv.reshape(B, S, 3 * H), mask_bias, nH)
        ctx = ctx.reshape(B * S, H)
        # Attention output projection + residual + LayerNorm fused.
        x = linear_residual_layernorm(ctx, layer["wo"], layer["bo"], x,
                                      layer["ln1_g"], layer["ln1_b"])
        # FFN: up-projection with exact-GELU epilogue, down-projection fused
        # with residual + LayerNorm.
        ff = linear(x, layer["w1"], layer["b1"], activation="gelu")
        x = linear_residual_layernorm(ff, layer["w2"], layer["b2"], x,
                                      layer["ln2_g"], layer["ln2_b"])

    # Pooler: tanh(W @ hidden[CLS] + b)  == outputs[1] of HF BertModel
    seq_out = x.reshape(B, S, H)
    cls = seq_out[:, 0, :]                                         # [B, H] bf16
    pooled = small_linear(cls, prep["pool_w"], prep["pool_b"],
                          activation="tanh", out_dtype=jnp.float32)

    # nn.Dropout(0.15): identity in eval/inference mode (deterministic).
    dropped = pooled

    # Sentiment classifier head (tiny, untiled, f32).
    logits = small_linear(dropped, prep["cls_w"], prep["cls_b"],
                          out_dtype=jnp.float32)
    return pooled, logits


# ----------------------------------- main -------------------------------------

if __name__ == "__main__":
    cfg = dict(vocab=100, hidden=32, heads=2, layers=2, intermediate=64,
               max_pos=16, type_vocab=2, num_labels=2)

    key = jax.random.PRNGKey(0)
    pkey, ikey = jax.random.split(key)
    params = init_params(pkey, cfg)
    prep = prepare_params(params, cfg)

    B, S = 2, 8
    input_ids = jax.random.randint(ikey, (B, S), 0, cfg["vocab"], dtype=jnp.int32)
    attention_mask = jnp.ones((B, S), dtype=jnp.int32)

    pooled, logits = bert_classifier_forward(prep, input_ids, attention_mask, cfg)
    jax.block_until_ready((pooled, logits))

    assert pooled.shape == (B, cfg["hidden"])
    assert logits.shape == (B, cfg["num_labels"])
    print("KERNEL_OK")
</pallas_src>

<mosaic_0001>
module attributes {stable_mosaic.version = 11 : i64} {
  func.func @_layernorm_kernel(%arg0: i32, %arg1: memref<16x32xf32, #tpu.memory_space<vmem>>, %arg2: memref<1x32xf32, #tpu.memory_space<vmem>>, %arg3: memref<1x32xf32, #tpu.memory_space<vmem>>, %arg4: memref<16x32xbf16, #tpu.memory_space<vmem>>) attributes {dimension_semantics = [#tpu.dimension_semantics<parallel>], iteration_bounds = array<i64: 1>, scalar_prefetch = 0 : i64, scratch_operands = 0 : i64, tpu.core_type = #tpu.core_type<tc>, window_params = [{transform_indices = @transform_0, window_bounds = array<i64: 16, 32>}, {pipeline_mode = #tpu.pipeline_mode<synchronous>, transform_indices = @transform_1, window_bounds = array<i64: 1, 32>}, {pipeline_mode = #tpu.pipeline_mode<synchronous>, transform_indices = @transform_2, window_bounds = array<i64: 1, 32>}, {transform_indices = @transform_3, window_bounds = array<i64: 16, 32>}]} {
    %c0 = arith.constant 0 : index
    %c0_0 = arith.constant 0 : index
    %0 = vector.load %arg1[%c0, %c0_0] : memref<16x32xf32, #tpu.memory_space<vmem>>, vector<16x32xf32>
    %cst = arith.constant dense<0.000000e+00> : vector<16xf32>
    %1 = vector.multi_reduction <add>, %0, %cst [1] : vector<16x32xf32> to vector<16xf32>
    %2 = vector.shape_cast %1 : vector<16xf32> to vector<16x1xf32>
    %cst_1 = arith.constant 3.200000e+01 : f32
    %3 = vector.broadcast %cst_1 : f32 to vector<16x1xf32>
    %4 = arith.divf %2, %3 : vector<16x1xf32>
    %5 = vector.broadcast %4 : vector<16x1xf32> to vector<16x32xf32>
    %6 = arith.subf %0, %5 : vector<16x32xf32>
    %7 = arith.mulf %6, %6 : vector<16x32xf32>
    %cst_2 = arith.constant dense<0.000000e+00> : vector<16xf32>
    %8 = vector.multi_reduction <add>, %7, %cst_2 [1] : vector<16x32xf32> to vector<16xf32>
    %9 = vector.shape_cast %8 : vector<16xf32> to vector<16x1xf32>
    %cst_3 = arith.constant 3.200000e+01 : f32
    %10 = vector.broadcast %cst_3 : f32 to vector<16x1xf32>
    %11 = arith.divf %9, %10 : vector<16x1xf32>
    %12 = vector.broadcast %4 : vector<16x1xf32> to vector<16x32xf32>
    %13 = arith.subf %0, %12 : vector<16x32xf32>
    %cst_4 = arith.constant 9.99999996E-13 : f32
    %14 = vector.broadcast %cst_4 : f32 to vector<16x1xf32>
    %15 = arith.addf %11, %14 : vector<16x1xf32>
    %16 = math.rsqrt %15 : vector<16x1xf32>
    %17 = vector.broadcast %16 : vector<16x1xf32> to vector<16x32xf32>
    %18 = arith.mulf %13, %17 : vector<16x32xf32>
    %c0_5 = arith.constant 0 : index
    %c0_6 = arith.constant 0 : index
    %19 = vector.load %arg2[%c0_5, %c0_6] : memref<1x32xf32, #tpu.memory_space<vmem>>, vector<1x32xf32>
    %20 = vector.broadcast %19 : vector<1x32xf32> to vector<16x32xf32>
    %21 = arith.mulf %18, %20 : vector<16x32xf32>
    %c0_7 = arith.constant 0 : index
    %c0_8 = arith.constant 0 : index
    %22 = vector.load %arg3[%c0_7, %c0_8] : memref<1x32xf32, #tpu.memory_space<vmem>>, vector<1x32xf32>
    %23 = vector.broadcast %22 : vector<1x32xf32> to vector<16x32xf32>
    %24 = arith.addf %21, %23 : vector<16x32xf32>
    %25 = arith.truncf %24 : vector<16x32xf32> to vector<16x32xbf16>
    %c0_9 = arith.constant 0 : index
    %c0_10 = arith.constant 0 : index
    %26 = vector.load %arg4[%c0_9, %c0_10] : memref<16x32xbf16, #tpu.memory_space<vmem>>, vector<16x32xbf16>
    tpu.vector_store %arg4[%c0_9, %c0_10], %25 {strides = array<i32>} : memref<16x32xbf16, #tpu.memory_space<vmem>>, vector<16x32xbf16>,
    return
  }
  func.func @transform_0(%arg0: i32) -> (i32, i32) {
    %c0_i32 = arith.constant 0 : i32
    %c0_i32_0 = arith.constant 0 : i32
    return %arg0, %c0_i32 : i32, i32
  }
  func.func @transform_1(%arg0: i32) -> (i32, i32) {
    %c0_i32 = arith.constant 0 : i32
    %c0_i32_0 = arith.constant 0 : i32
    %c0_i32_1 = arith.constant 0 : i32
    return %c0_i32, %c0_i32_0 : i32, i32
  }
  func.func @transform_2(%arg0: i32) -> (i32, i32) {
    %c0_i32 = arith.constant 0 : i32
    %c0_i32_0 = arith.constant 0 : i32
    %c0_i32_1 = arith.constant 0 : i32
    return %c0_i32, %c0_i32_0 : i32, i32
  }
  func.func @transform_3(%arg0: i32) -> (i32, i32) {
    %c0_i32 = arith.constant 0 : i32
    %c0_i32_0 = arith.constant 0 : i32
    return %arg0, %c0_i32 : i32, i32
  }
}

</mosaic_0001>

<bundles_post_ra>
// kernel: tpu_custom_call.1
= control target key start
LH: loop header
LB: loop body
LE: loop exit
PB: predicated region body
PF: predicated region fallthrough
CT: control target
= control target key end

     0   :  { %8 = vsyncpa [#allocation3], 0  ;;  %s207_s0 = inlined_call_operand.hbm [shape: f32[16,32], index: 0, kind: input, shape index: {}]   ;;  %s208_s1 = inlined_call_operand.vmem [shape: f32[1,32], index: 1, kind: input, shape index: {}]   ;;  %s209_s2 = inlined_call_operand.vmem [shape: f32[1,32], index: 2, kind: input, shape index: {}]   ;;  %s210_s3 = inlined_call_operand.hbm [shape: bf16[16,32], index: 3, kind: output, shape index: {}]  }
   0x1   :  { %9 = vsyncpa [#allocation4], 0  ;;  %s165_s12 = smov [#allocation2]  }
   0x2   :  { %s15_s13 = sshll.u32 %s165_s12, 4  ;;  %s16_s13 = int_to_ptr.vmem [resolvable:$true] %s15_s13 }
   0x3   :  { %s129_s14 = scalar_lea.vmem %s16_s13, 256  ;;  %p134_p1 = scmp.lt.s32.totalorder %s16_s13, %s16_s13 }
   0x4   :  { %p130_p0 = scmp.ne.s32.totalorder %s16_s13, %s129_s14  ;;  %p135_p2 = scmp.lt.s32.totalorder %s129_s14, %s129_s14 }
   0x6   :  { %p136_p3 = por %p135_p2, %p134_p1 }
   0x8   :  { %p137_p4 = pnand %p136_p3, %p130_p0 }
   0xa   :  { %140 = shalt.err (!%p137_p4)
}
   0xb   :  { %s166_s15 = smov 128   ;;  %s167_s16 = smov 8  }
   0xc   :  { %21 = dma.hbm_to_vmem [thread:$0]  %s207_s0, 256, %s16_s13, [#allocation3], %s166_s15, %s166_s15, %s167_s16  }
   0xd   :  { %161 = dma.done.wait [#allocation3], 256  }
   0xe   :  { %162 = vsyncadd [#allocation3], 4294967040  ;;  %vm31_vm0 = vcmask 261120   ;;  %v29_v0 = vld [vmem:[#allocation2] sm:$0xff]  ;;  %v30_v1 = vld [vmem:[#allocation2 + $0x8] sm:$0xff]  ;;  %vm85_vm1 = vcmask 257024  }
   0xf   :  { %v32_v2 = vsel %vm31_vm0, %v29_v0, 0.0  ;;  %v35_v3 = vsel %vm31_vm0, %v30_v1, 0.0  ;;  %v105_v21 = vld [vmem:[%s208_s1] ss:$0 sm:$0xff]  ;;  %s168_s22 = smov [#allocation5]  }
  0x10   :  { %33 = vadd.xlane.f32.xlu0 %v32_v2  ;;  %v106_v23 = vld [vmem:[%s209_s2] ss:$0 sm:$0xff]  ;;  %s93_s23 = sshll.u32 %s168_s22, 4  ;;  %s94_s23 = int_to_ptr.vmem [resolvable:$true] %s93_s23 }
  0x11   :  { %s141_s1 = scalar_lea.vmem %s94_s23, 128  ;;  %p146_p6 = scmp.lt.s32.totalorder %s94_s23, %s94_s23 }
  0x12   :  { %p142_p5 = scmp.ne.s32.totalorder %s94_s23, %s141_s1  ;;  %p147_p7 = scmp.lt.s32.totalorder %s141_s1, %s141_s1 }
  0x14   :  { %36 = vadd.xlane.f32.xlu0 %v35_v3  ;;  %p148_p8 = por %p147_p7, %p146_p6 }
  0x16   :  { %p149_p9 = pnand %p148_p8, %p142_p5 }
  0x99   :  { %v34_v4 = vpop.xlane.xlu0 %33 }
  0x9a   :  { %v39_v5 = vmul.f32 0.03125, %v34_v4 }
  0x9c   :  { %v41_v6 = vsub.f32 %v29_v0, %v39_v5 }
  0x9d   :  { %v37_v7 = vpop.xlane.xlu0 %36 }
  0x9e   :  { %v40_v8 = vmul.f32 0.03125, %v37_v7  ;;  %v43_v9 = vmul.f32 %v41_v6, %v41_v6 }
  0xa0   :  { %v42_v10 = vsub.f32 %v30_v1, %v40_v8  ;;  %v45_v11 = vsel %vm31_vm0, %v43_v9, 0.0 }
  0xa1   :  { %46 = vadd.xlane.f32.xlu1 %v45_v11 }
  0xa2   :  { %v44_v12 = vmul.f32 %v42_v10, %v42_v10 }
  0xa4   :  { %v48_v13 = vsel %vm31_vm0, %v44_v12, 0.0 }
  0xa5   :  { %49 = vadd.xlane.f32.xlu1 %v48_v13 }
 0x12a   :  { %v47_v14 = vpop.xlane.xlu1 %46 }
 0x12b   :  { %v51_v15 = vmul.f32 0.03125, %v47_v14 }
 0x12d   :  { %v53_v16 = vadd.f32 1e-12, %v51_v15 }
 0x12e   :  { %v50_v17 = vpop.xlane.xlu1 %49 }
 0x12f   :  { %117 = vrsqrt.f32 %v53_v16  ;;  %v52_v18 = vmul.f32 0.03125, %v50_v17 }
 0x131   :  { %v54_v19 = vadd.f32 1e-12, %v52_v18 }
 0x133   :  { %119 = vrsqrt.f32 %v54_v19 }
 0x13c   :  { %v118_v20 = vpop.eup %117 }
 0x13d   :  { %v57_v22 = vmul.f32 %v118_v20, %v41_v6 }
 0x13f   :  { %v66_v24 = vmul.f32 %v105_v21, %v57_v22 }
 0x140   :  { %v120_v25 = vpop.eup %119 }
 0x141   :  { %v58_v26 = vmul.f32 %v120_v25, %v42_v10  ;;  %v75_v27 = vadd.f32 %v106_v23, %v66_v24 }
 0x143   :  { %v67_v28 = vmul.f32 %v105_v21, %v58_v26  ;;  %v109_v29 = vpack.c.bf16 %v75_v27, %v75_v27 }
 0x145   :  { %v76_v30 = vadd.f32 %v106_v23, %v67_v28  ;;  %86 = vst.msk [vmem:[#allocation5] sm:$0xf] %vm85_vm1, %v109_v29 }
 0x147   :  { %v110_v31 = vpack.c.bf16 %v76_v30, %v76_v30 }
 0x149   :  { %87 = vst.msk [vmem:[#allocation5 + $0x4] sm:$0xf] %vm85_vm1, %v110_v31 }
 0x14a   :  { %152 = shalt.err (!%p149_p9)
}
 0x14b   :  { %s169_s2 = smov 64   ;;  %s170_s24 = smov 4  }
 0x14c   :  { %99 = dma.vmem_to_hbm [thread:$0]  %s94_s23, 128, %s210_s3, [#allocation4], %s169_s2, %s169_s2, %s170_s24  }
 0x14d   :  { %163 = dma.done.wait [#allocation4], 128  }
 0x14e   :  { %164 = vsyncadd [#allocation4], 4294967168 }
 0x14f   :  { %103 = vsyncpa [#allocation3], 1 }
 0x150   :  { %104 = vsyncpa [#allocation4], 1 }

</bundles_post_ra>
